<compile_context>
chip_gen: v6e
topology: v6e:2x2x1
jax: 0.10.0
libtpu: 0.0.40
codegen_flags: <defaults>
</compile_context>

<pallas_src>
import functools

import jax
import jax.numpy as jnp
from jax import lax
from jax.experimental import pallas as pl
from jax.experimental.pallas import tpu as pltpu

_SUBLANE = 8
_LANE = 128
_TF_MAX = 4096                    # feature tile when F is split (multiple of 128)
_VMEM_PLAN_BYTES = 28 << 20       # double-buffered plan budget (v7x-safe)
_VMEM_LIMIT_CAP = 48 << 20        # scoped-VMEM request ceiling (v7x headroom)


def _pad_lanes(n):
    return ((n + _LANE - 1) // _LANE) * _LANE


def _linear_kernel(x_ref, w_ref, b_ref, o_ref, acc_ref, *, f_total):
    # x_ref : (tb, tf) VMEM        w_ref : (1, tf) VMEM (lane-dense row)
    # b_ref : (1,)    SMEM         o_ref : (tb, 1) VMEM
    # acc_ref: (tb, 1) f32 VMEM scratch, resident across the feature axis.
    k = pl.program_id(1)
    nk = pl.num_programs(1)
    tf = x_ref.shape[-1]

    @pl.when(k == 0)
    def _init():
        acc_ref[...] = jnp.zeros_like(acc_ref)

    x = x_ref[...].astype(jnp.float32)          # f32 accumulation even for bf16
    w = w_ref[...].astype(jnp.float32)
    prod = x * w                                # VPU, weight row broadcast

    if f_total % tf != 0:
        # Ragged last feature block: OOB lanes of x/w hold garbage -> zero the
        # product so it cannot contaminate the accumulator (NaN-safe).
        col = lax.broadcasted_iota(jnp.int32, prod.shape, 1) + k * tf
        prod = jnp.where(col < f_total, prod, 0.0)

    acc_ref[...] += jnp.sum(prod, axis=-1, keepdims=True)   # XLU lane reduce

    @pl.when(k == nk - 1)
    def _finalize():
        out = acc_ref[...] + b_ref[0].astype(jnp.float32)   # scalar bias (SMEM)
        o_ref[...] = out.astype(o_ref.dtype)


def _plan_tiles(B, F, itemsize):
    """Byte-based tile plan: (tb, tf, num_batch_blocks, num_feature_blocks)."""
    tf = F if F <= _TF_MAX else _TF_MAX
    nk = pl.cdiv(F, tf)

    # Per-row lane-padded VMEM cost of the double-buffered streams + scratch.
    row_bytes = (2 * _pad_lanes(tf) * itemsize   # x double buffer
                 + 2 * _LANE * 4                 # (tb, 1) output double buffer
                 + _LANE * 4)                    # f32 accumulator scratch
    tb = max(_SUBLANE, (_VMEM_PLAN_BYTES // row_bytes) // _SUBLANE * _SUBLANE)
    tb = min(tb, pl.cdiv(B, _SUBLANE) * _SUBLANE)

    # v7x megacore: give the "parallel" batch axis at least 2 blocks.
    if B >= 2 * _SUBLANE and pl.cdiv(B, tb) < 2:
        tb = max(_SUBLANE, pl.cdiv(B, 2 * _SUBLANE) * _SUBLANE)

    nb = pl.cdiv(B, tb)
    return tb, tf, nb, nk


def linear_model_forward(x, weight, bias):
    """x: (B, F); weight: (1, F) (nn.Linear layout) or (F,); bias: (1,) or ().

    Returns (B,), matching LinearModel.forward(x) == linear(x).squeeze(-1).
    """
    B, F = x.shape
    w_row = jnp.asarray(weight, x.dtype).reshape(1, F)
    b_vec = jnp.asarray(bias, x.dtype).reshape(1)

    itemsize = jnp.dtype(x.dtype).itemsize
    tb, tf, nb, nk = _plan_tiles(B, F, itemsize)

    # Scoped-VMEM request: cover the double-buffered plan with headroom,
    # capped well under v7x's 64 MiB physical per-TC VMEM.
    plan_bytes = (2 * (tb * _pad_lanes(tf) * itemsize            # x blocks
                       + _SUBLANE * _pad_lanes(tf) * itemsize    # weight row
                       + tb * _LANE * 4)                         # out blocks
                  + tb * _LANE * 4)                              # acc scratch
    vmem_limit = int(min(_VMEM_LIMIT_CAP, max(16 << 20, plan_bytes + (8 << 20))))

    kernel = functools.partial(_linear_kernel, f_total=F)

    out = pl.pallas_call(
        kernel,
        out_shape=jax.ShapeDtypeStruct((B, 1), x.dtype),
        grid=(nb, nk),
        in_specs=[
            pl.BlockSpec((tb, tf), lambda i, k: (i, k)),           # x: batch x feature tiles
            pl.BlockSpec((1, tf), lambda i, k: (0, k)),            # weight: feature tiles
            pl.BlockSpec(memory_space=pltpu.MemorySpace.SMEM),     # bias: SMEM scalar
        ],
        out_specs=pl.BlockSpec((tb, 1), lambda i, k: (i, 0)),      # revisited across k
        scratch_shapes=[pltpu.VMEM((tb, 1), jnp.float32)],
        compiler_params=pltpu.CompilerParams(
            dimension_semantics=("parallel", "arbitrary"),
            vmem_limit_bytes=vmem_limit,
        ),
    )(x, w_row, b_vec)

    return out[:, 0]   # squeeze(-1)


if __name__ == "__main__":
    key = jax.random.PRNGKey(0)

    def make_case(k, B, F):
        kx, kw, kb = jax.random.split(k, 3)
        x = jax.random.normal(kx, (B, F), dtype=jnp.float32)
        bound = 1.0 / (F ** 0.5)
        weight = jax.random.uniform(kw, (1, F), minval=-bound, maxval=bound,
                                    dtype=jnp.float32)
        bias = jax.random.uniform(kb, (1,), minval=-bound, maxval=bound,
                                  dtype=jnp.float32)
        return x, weight, bias

    k1, k2 = jax.random.split(key)

    # Small shape consistent with the module: batch=8, num_features=32.
    x, w, b = make_case(k1, 8, 32)
    y = jax.block_until_ready(linear_model_forward(x, w, b))
    y_ref = (x @ w.T + b)[:, 0]
    assert y.shape == (8,)
    assert jnp.allclose(y, y_ref, atol=1e-4, rtol=1e-4)

    # Ragged shape: exercises the feature-reduction grid axis, the masked
    # ragged last feature block, and the partial last batch block (no padding).
    x, w, b = make_case(k2, 300, 9000)
    y = jax.block_until_ready(linear_model_forward(x, w, b))
    y_ref = (x @ w.T + b)[:, 0]
    assert y.shape == (300,)
    assert jnp.allclose(y, y_ref, atol=2e-3, rtol=2e-3)

    print("KERNEL_OK")
</pallas_src>

<mosaic_0001>
module attributes {stable_mosaic.version = 11 : i64} {
  func.func @_linear_kernel(%arg0: i32, %arg1: i32, %arg2: memref<8x32xf32, #tpu.memory_space<vmem>>, %arg3: memref<1x32xf32, #tpu.memory_space<vmem>>, %arg4: memref<1xf32, #tpu.memory_space<smem>>, %arg5: memref<8x1xf32, #tpu.memory_space<vmem>>, %arg6: memref<8x1xf32, #tpu.memory_space<vmem>>) attributes {dimension_semantics = [#tpu.dimension_semantics<parallel>, #tpu.dimension_semantics<arbitrary>], iteration_bounds = array<i64: 1, 1>, scalar_prefetch = 0 : i64, scratch_operands = 1 : i64, tpu.core_type = #tpu.core_type<tc>, window_params = [{transform_indices = @transform_0, window_bounds = array<i64: 8, 32>}, {transform_indices = @transform_1, window_bounds = array<i64: 1, 32>}, {transform_indices = @transform_2, window_bounds = array<i64: 1>}, {transform_indices = @transform_3, window_bounds = array<i64: 8, 1>}]} {
    %c0_i32 = arith.constant 0 : i32
    %0 = arith.cmpi eq, %arg1, %c0_i32 : i32
    %1 = arith.extui %0 : i1 to i32
    %c0_i32_0 = arith.constant 0 : i32
    %2 = arith.cmpi ne, %1, %c0_i32_0 : i32
    scf.if %2 {
      %cst_10 = arith.constant 0.000000e+00 : f32
      %15 = vector.broadcast %cst_10 : f32 to vector<8x1xf32>
      %c0_11 = arith.constant 0 : index
      %c0_12 = arith.constant 0 : index
      %16 = vector.load %arg6[%c0_11, %c0_12] : memref<8x1xf32, #tpu.memory_space<vmem>>, vector<8x1xf32>
      tpu.vector_store %arg6[%c0_11, %c0_12], %15 {strides = array<i32>} : memref<8x1xf32, #tpu.memory_space<vmem>>, vector<8x1xf32>,
    } else {
    }
    %c0 = arith.constant 0 : index
    %c0_1 = arith.constant 0 : index
    %3 = vector.load %arg2[%c0, %c0_1] : memref<8x32xf32, #tpu.memory_space<vmem>>, vector<8x32xf32>
    %c0_2 = arith.constant 0 : index
    %c0_3 = arith.constant 0 : index
    %4 = vector.load %arg3[%c0_2, %c0_3] : memref<1x32xf32, #tpu.memory_space<vmem>>, vector<1x32xf32>
    %5 = vector.broadcast %4 : vector<1x32xf32> to vector<8x32xf32>
    %6 = arith.mulf %3, %5 : vector<8x32xf32>
    %c0_4 = arith.constant 0 : index
    %c0_5 = arith.constant 0 : index
    %7 = vector.load %arg6[%c0_4, %c0_5] : memref<8x1xf32, #tpu.memory_space<vmem>>, vector<8x1xf32>
    %cst = arith.constant dense<0.000000e+00> : vector<8xf32>
    %8 = vector.multi_reduction <add>, %6, %cst [1] : vector<8x32xf32> to vector<8xf32>
    %9 = vector.shape_cast %8 : vector<8xf32> to vector<8x1xf32>
    %10 = arith.addf %7, %9 : vector<8x1xf32>
    %c0_6 = arith.constant 0 : index
    %c0_7 = arith.constant 0 : index
    %11 = vector.load %arg6[%c0_6, %c0_7] : memref<8x1xf32, #tpu.memory_space<vmem>>, vector<8x1xf32>
    tpu.vector_store %arg6[%c0_6, %c0_7], %10 {strides = array<i32>} : memref<8x1xf32, #tpu.memory_space<vmem>>, vector<8x1xf32>,
    %c0_i32_8 = arith.constant 0 : i32
    %12 = arith.cmpi eq, %arg1, %c0_i32_8 : i32
    %13 = arith.extui %12 : i1 to i32
    %c0_i32_9 = arith.constant 0 : i32
    %14 = arith.cmpi ne, %13, %c0_i32_9 : i32
    scf.if %14 {
      %c0_10 = arith.constant 0 : index
      %c0_11 = arith.constant 0 : index
      %15 = vector.load %arg6[%c0_10, %c0_11] : memref<8x1xf32, #tpu.memory_space<vmem>>, vector<8x1xf32>
      %c0_12 = arith.constant 0 : index
      %16 = memref.load %arg4[%c0_12] : memref<1xf32, #tpu.memory_space<smem>>
      %17 = vector.broadcast %16 : f32 to vector<8x1xf32>
      %18 = arith.addf %15, %17 : vector<8x1xf32>
      %c0_13 = arith.constant 0 : index
      %c0_14 = arith.constant 0 : index
      %19 = vector.load %arg5[%c0_13, %c0_14] : memref<8x1xf32, #tpu.memory_space<vmem>>, vector<8x1xf32>
      tpu.vector_store %arg5[%c0_13, %c0_14], %18 {strides = array<i32>} : memref<8x1xf32, #tpu.memory_space<vmem>>, vector<8x1xf32>,
    } else {
    }
    return
  }
  func.func @transform_0(%arg0: i32, %arg1: i32) -> (i32, i32) {
    %c0_i32 = arith.constant 0 : i32
    return %arg0, %arg1 : i32, i32
  }
  func.func @transform_1(%arg0: i32, %arg1: i32) -> (i32, i32) {
    %c0_i32 = arith.constant 0 : i32
    %c0_i32_0 = arith.constant 0 : i32
    return %c0_i32, %arg1 : i32, i32
  }
  func.func @transform_2(%arg0: i32, %arg1: i32) -> i32 {
    %c0_i32 = arith.constant 0 : i32
    %c0_i32_0 = arith.constant 0 : i32
    return %c0_i32 : i32
  }
  func.func @transform_3(%arg0: i32, %arg1: i32) -> (i32, i32) {
    %c0_i32 = arith.constant 0 : i32
    %c0_i32_0 = arith.constant 0 : i32
    return %arg0, %c0_i32 : i32, i32
  }
}

</mosaic_0001>

<bundles_post_ra>
// kernel: tpu_custom_call.1
= control target key start
LH: loop header
LB: loop body
LE: loop exit
PB: predicated region body
PF: predicated region fallthrough
CT: control target
= control target key end

     0   :  { %9 = vsyncpa [#allocation5], 0  ;;  %s88_s12 = smov [#allocation4]   ;;  %s125_s0 = inlined_call_operand.hbm [shape: f32[8,32], index: 0, kind: input, shape index: {}]   ;;  %s126_s1 = inlined_call_operand.vmem [shape: f32[1,32], index: 1, kind: input, shape index: {}]   ;;  %s127_s2 = inlined_call_operand.<no memory space> [shape: f32[1], index: 2, kind: input, shape index: {}]   ;;  %s128_s3 = inlined_call_operand.vmem [shape: f32[8,1], index: 3, kind: output, shape index: {}]  }
   0x1   :  { %s16_s13 = sshll.u32 %s88_s12, 4  ;;  %s17_s13 = int_to_ptr.vmem [resolvable:$true] %s16_s13 }
   0x2   :  { %s74_s14 = scalar_lea.vmem %s17_s13, 128  ;;  %p79_p1 = scmp.lt.s32.totalorder %s17_s13, %s17_s13 }
   0x3   :  { %p75_p0 = scmp.ne.s32.totalorder %s17_s13, %s74_s14  ;;  %p80_p2 = scmp.lt.s32.totalorder %s74_s14, %s74_s14 }
   0x5   :  { %p81_p3 = por %p80_p2, %p79_p1 }
   0x7   :  { %p82_p4 = pnand %p81_p3, %p75_p0 }
   0x9   :  { %85 = shalt.err (!%p82_p4)
}
   0xa   :  { %19 = dma.hbm_to_vmem [thread:$0]  %s125_s0, 128, %s17_s13, [#allocation5]  }
   0xb   :  { %86 = dma.done.wait [#allocation5], 128  }
   0xc   :  { %87 = vsyncadd [#allocation5], 4294967168  ;;  %vm31_vm0 = vcmask 7168   ;;  %v89_v0 = vmov 0.0   ;;  %v33_v1 = vld [vmem:[#allocation4] sm:$0xff]  ;;  %vm43_vm1 = vcmask 261120   ;;  %v55_v8 = vstv %s127_s2 }
   0xd   :  { %32 = vst.msk [vmem:[#allocation2] sm:$0xff] %vm31_vm0, %v89_v0  ;;  %v63_v2 = vld [vmem:[%s126_s1] ss:$0 sm:$0xff] }
   0xe   :  { %v41_v3 = vmul.f32 %v63_v2, %v33_v1 }
  0x10   :  { %v44_v4 = vsel %vm43_vm1, %v41_v3, 0.0 }
  0x11   :  { %45 = vadd.xlane.f32.xlu0 %v44_v4 }
  0x14   :  { %v42_v5 = vld [vmem:[#allocation2] sm:$0xff] }
  0x9a   :  { %v46_v6 = vpop.xlane.xlu0 %45 }
  0x9b   :  { %v47_v7 = vadd.f32 %v46_v6, %v42_v5 }
  0x9d   :  { %49 = vst.msk [vmem:[#allocation2] sm:$0xff] %vm31_vm0, %v47_v7 }
  0xa4   :  { %v53_v9 = vld [vmem:[#allocation2] sm:$0xff] }
  0xa5   :  { %v56_v10 = vadd.f32 %v55_v8, %v53_v9 }
  0xa7   :  { %57 = vst.msk [vmem:[%s128_s3] sm:$0xff] %vm31_vm0, %v56_v10 }
  0xa8   :  { %62 = vsyncpa [#allocation5], 1 }

</bundles_post_ra>
